<compile_context>
chip_gen: v7x
topology: tpu7x:2x2x1
jax: 0.10.0
libtpu: 0.0.40
codegen_flags: <defaults>
</compile_context>

<pallas_src>
import functools

import jax
import jax.numpy as jnp
from jax.experimental import pallas as pl
from jax.experimental.pallas import tpu as pltpu


# ---------------------------------------------------------------------------
# Pallas kernel: the entire MLP, chained in VMEM.
# refs = (x_ref, w_0, shift_0, w_1, shift_1, ..., w_{L-1}, shift_{L-1}, o_ref)
# ---------------------------------------------------------------------------
def _fused_mlp_kernel(*refs, num_layers):
    x_ref = refs[0]
    o_ref = refs[-1]
    layer_refs = refs[1:-1]

    h = x_ref[...].astype(jnp.float32)
    for li in range(num_layers):
        w = layer_refs[2 * li][...]
        shift = layer_refs[2 * li + 1][...]
        z = jnp.dot(h, w, preferred_element_type=jnp.float32) + shift
        if li < num_layers - 1:
            h = jnp.maximum(z, 0.0)          # hidden layers: ReLU
        else:
            h = jax.nn.sigmoid(z)            # final layer: Sigmoid
    o_ref[...] = h.astype(o_ref.dtype)


def fused_mlp_forward(folded_layers, x, *, batch_tile=None):
    """folded_layers: list of (w_folded (K,N) f32, shift (1,N) f32); x: (B, K0)."""
    B, in_dim = x.shape
    assert folded_layers[0][0].shape[0] == in_dim
    out_dim = folded_layers[-1][0].shape[1]
    num_layers = len(folded_layers)

    # Batch tiling: whole batch in one block for small B; tile (parallel axis)
    # for large B so the two TCs on v7x can split it and DMAs pipeline.
    if batch_tile is None:
        batch_tile = B if B <= 256 else 256
    grid = (pl.cdiv(B, batch_tile),)

    in_specs = [pl.BlockSpec((batch_tile, in_dim), lambda i: (i, 0))]
    flat_inputs = [x]
    for w, shift in folded_layers:
        in_specs.append(pl.BlockSpec(w.shape, lambda i: (0, 0)))      # resident
        in_specs.append(pl.BlockSpec(shift.shape, lambda i: (0, 0)))  # resident
        flat_inputs.append(w)
        flat_inputs.append(shift)

    kernel = functools.partial(_fused_mlp_kernel, num_layers=num_layers)
    return pl.pallas_call(
        kernel,
        out_shape=jax.ShapeDtypeStruct((B, out_dim), x.dtype),
        grid_spec=pltpu.PrefetchScalarGridSpec(
            num_scalar_prefetch=0,
            grid=grid,
            in_specs=in_specs,
            out_specs=pl.BlockSpec((batch_tile, out_dim), lambda i: (i, 0)),
        ),
        compiler_params=pltpu.CompilerParams(
            dimension_semantics=("parallel",)),
    )(*flat_inputs)


# ---------------------------------------------------------------------------
# mlp_decoder: parameters, one-time BN/bias folding, forward
# ---------------------------------------------------------------------------
def init_mlp_decoder_params(key, in_dim, out_dim, hidden_dims=None, bn=True):
    if hidden_dims is None:
        hidden_dims = [128, 256, 128]
    dims = [in_dim] + hidden_dims
    params = {"pre": [], "bn": bn}
    for i in range(len(dims) - 1):
        key, kw, kb = jax.random.split(key, 3)
        fan_in = dims[i]
        w = jax.random.normal(kw, (dims[i], dims[i + 1]), jnp.float32) / jnp.sqrt(fan_in)
        b = jax.random.normal(kb, (dims[i + 1],), jnp.float32) * 0.01
        layer = {"w": w, "b": b}
        if bn:
            # deterministic (inference-mode) BatchNorm1d statistics / affine
            layer["gamma"] = jnp.ones((dims[i + 1],), jnp.float32)
            layer["beta"] = jnp.zeros((dims[i + 1],), jnp.float32)
            layer["running_mean"] = jnp.zeros((dims[i + 1],), jnp.float32)
            layer["running_var"] = jnp.ones((dims[i + 1],), jnp.float32)
        params["pre"].append(layer)
    key, kw, kb = jax.random.split(key, 3)
    params["dec_w"] = jax.random.normal(kw, (dims[-1], out_dim), jnp.float32) / jnp.sqrt(dims[-1])
    params["dec_b"] = jax.random.normal(kb, (out_dim,), jnp.float32) * 0.01
    return params


def fold_mlp_decoder_params(params, eps=1e-5):
    """One-time constant fold of inference BatchNorm + bias into (w, shift)."""
    # TODO(synk): training-mode BatchNorm (batch statistics) and Dropout>0 are
    # not modeled; this implements the deterministic inference forward pass.
    folded = []
    for layer in params["pre"]:
        w, b = layer["w"], layer["b"]
        if params["bn"]:
            scale = layer["gamma"] / jnp.sqrt(layer["running_var"] + eps)
            w = w * scale[None, :]
            shift = (b - layer["running_mean"]) * scale + layer["beta"]
        else:
            shift = b
        folded.append((w, shift.reshape(1, -1)))
    folded.append((params["dec_w"], params["dec_b"].reshape(1, -1)))
    return folded


def mlp_decoder_forward(folded_layers, x):
    return fused_mlp_forward(folded_layers, x)


# ---------------------------------------------------------------------------
if __name__ == "__main__":
    key = jax.random.PRNGKey(0)
    B, in_dim, out_dim = 8, 32, 16

    kp, kx = jax.random.split(key)
    params = init_mlp_decoder_params(kp, in_dim, out_dim)   # hidden [128, 256, 128]
    folded = fold_mlp_decoder_params(params)                # one-time BN fold
    x = jax.random.normal(kx, (B, in_dim), jnp.float32)

    y = mlp_decoder_forward(folded, x)
    jax.block_until_ready(y)

    # lightweight sanity check against plain-JAX reference (unfolded math)
    def ref(params, x):
        eps = 1e-5
        h = x
        for layer in params["pre"]:
            z = h @ layer["w"] + layer["b"]
            z = (z - layer["running_mean"]) / jnp.sqrt(layer["running_var"] + eps)
            z = z * layer["gamma"] + layer["beta"]
            h = jnp.maximum(z, 0.0)
        return jax.nn.sigmoid(h @ params["dec_w"] + params["dec_b"])

    y_ref = ref(params, x)
    assert y.shape == (B, out_dim)
    assert jnp.max(jnp.abs(y - y_ref)) < 1e-4

    print("KERNEL_OK")
</pallas_src>

<mosaic_0001>
module attributes {stable_mosaic.version = 11 : i64} {
  func.func @_fused_mlp_kernel(%arg0: i32, %arg1: memref<8x32xf32, #tpu.memory_space<vmem>>, %arg2: memref<32x128xf32, #tpu.memory_space<vmem>>, %arg3: memref<1x128xf32, #tpu.memory_space<vmem>>, %arg4: memref<128x256xf32, #tpu.memory_space<vmem>>, %arg5: memref<1x256xf32, #tpu.memory_space<vmem>>, %arg6: memref<256x128xf32, #tpu.memory_space<vmem>>, %arg7: memref<1x128xf32, #tpu.memory_space<vmem>>, %arg8: memref<128x16xf32, #tpu.memory_space<vmem>>, %arg9: memref<1x16xf32, #tpu.memory_space<vmem>>, %arg10: memref<8x16xf32, #tpu.memory_space<vmem>>) attributes {dimension_semantics = [#tpu.dimension_semantics<parallel>], iteration_bounds = array<i64: 1>, scalar_prefetch = 0 : i64, scratch_operands = 0 : i64, tpu.core_type = #tpu.core_type<tc>, window_params = [{transform_indices = @transform_0, window_bounds = array<i64: 8, 32>}, {pipeline_mode = #tpu.pipeline_mode<synchronous>, transform_indices = @transform_1, window_bounds = array<i64: 32, 128>}, {pipeline_mode = #tpu.pipeline_mode<synchronous>, transform_indices = @transform_2, window_bounds = array<i64: 1, 128>}, {pipeline_mode = #tpu.pipeline_mode<synchronous>, transform_indices = @transform_3, window_bounds = array<i64: 128, 256>}, {pipeline_mode = #tpu.pipeline_mode<synchronous>, transform_indices = @transform_4, window_bounds = array<i64: 1, 256>}, {pipeline_mode = #tpu.pipeline_mode<synchronous>, transform_indices = @transform_5, window_bounds = array<i64: 256, 128>}, {pipeline_mode = #tpu.pipeline_mode<synchronous>, transform_indices = @transform_6, window_bounds = array<i64: 1, 128>}, {pipeline_mode = #tpu.pipeline_mode<synchronous>, transform_indices = @transform_7, window_bounds = array<i64: 128, 16>}, {pipeline_mode = #tpu.pipeline_mode<synchronous>, transform_indices = @transform_8, window_bounds = array<i64: 1, 16>}, {transform_indices = @transform_9, window_bounds = array<i64: 8, 16>}]} {
    %c0 = arith.constant 0 : index
    %c0_0 = arith.constant 0 : index
    %0 = vector.load %arg1[%c0, %c0_0] : memref<8x32xf32, #tpu.memory_space<vmem>>, vector<8x32xf32>
    %c0_1 = arith.constant 0 : index
    %c0_2 = arith.constant 0 : index
    %1 = vector.load %arg2[%c0_1, %c0_2] : memref<32x128xf32, #tpu.memory_space<vmem>>, vector<32x128xf32>
    %c0_3 = arith.constant 0 : index
    %c0_4 = arith.constant 0 : index
    %2 = vector.load %arg3[%c0_3, %c0_4] : memref<1x128xf32, #tpu.memory_space<vmem>>, vector<1x128xf32>
    %cst = arith.constant dense<0.000000e+00> : vector<8x128xf32>
    %3 = tpu.matmul %0, %1, %cst {dimension_numbers = #tpu.dot_dimension_numbers<[1], [0], [0], [1], [0, 0, 1, 1], [], []>} : vector<8x32xf32>, vector<32x128xf32>, vector<8x128xf32> -> vector<8x128xf32>
    %4 = vector.broadcast %2 : vector<1x128xf32> to vector<8x128xf32>
    %5 = arith.addf %3, %4 : vector<8x128xf32>
    %cst_5 = arith.constant 0.000000e+00 : f32
    %6 = vector.broadcast %cst_5 : f32 to vector<8x128xf32>
    %7 = arith.maximumf %5, %6 : vector<8x128xf32>
    %c0_6 = arith.constant 0 : index
    %c0_7 = arith.constant 0 : index
    %8 = vector.load %arg4[%c0_6, %c0_7] : memref<128x256xf32, #tpu.memory_space<vmem>>, vector<128x256xf32>
    %c0_8 = arith.constant 0 : index
    %c0_9 = arith.constant 0 : index
    %9 = vector.load %arg5[%c0_8, %c0_9] : memref<1x256xf32, #tpu.memory_space<vmem>>, vector<1x256xf32>
    %cst_10 = arith.constant dense<0.000000e+00> : vector<8x256xf32>
    %10 = tpu.matmul %7, %8, %cst_10 {dimension_numbers = #tpu.dot_dimension_numbers<[1], [0], [0], [1], [0, 0, 1, 1], [], []>} : vector<8x128xf32>, vector<128x256xf32>, vector<8x256xf32> -> vector<8x256xf32>
    %11 = vector.broadcast %9 : vector<1x256xf32> to vector<8x256xf32>
    %12 = arith.addf %10, %11 : vector<8x256xf32>
    %cst_11 = arith.constant 0.000000e+00 : f32
    %13 = vector.broadcast %cst_11 : f32 to vector<8x256xf32>
    %14 = arith.maximumf %12, %13 : vector<8x256xf32>
    %c0_12 = arith.constant 0 : index
    %c0_13 = arith.constant 0 : index
    %15 = vector.load %arg6[%c0_12, %c0_13] : memref<256x128xf32, #tpu.memory_space<vmem>>, vector<256x128xf32>
    %c0_14 = arith.constant 0 : index
    %c0_15 = arith.constant 0 : index
    %16 = vector.load %arg7[%c0_14, %c0_15] : memref<1x128xf32, #tpu.memory_space<vmem>>, vector<1x128xf32>
    %cst_16 = arith.constant dense<0.000000e+00> : vector<8x128xf32>
    %17 = tpu.matmul %14, %15, %cst_16 {dimension_numbers = #tpu.dot_dimension_numbers<[1], [0], [0], [1], [0, 0, 1, 1], [], []>} : vector<8x256xf32>, vector<256x128xf32>, vector<8x128xf32> -> vector<8x128xf32>
    %18 = vector.broadcast %16 : vector<1x128xf32> to vector<8x128xf32>
    %19 = arith.addf %17, %18 : vector<8x128xf32>
    %cst_17 = arith.constant 0.000000e+00 : f32
    %20 = vector.broadcast %cst_17 : f32 to vector<8x128xf32>
    %21 = arith.maximumf %19, %20 : vector<8x128xf32>
    %c0_18 = arith.constant 0 : index
    %c0_19 = arith.constant 0 : index
    %22 = vector.load %arg8[%c0_18, %c0_19] : memref<128x16xf32, #tpu.memory_space<vmem>>, vector<128x16xf32>
    %c0_20 = arith.constant 0 : index
    %c0_21 = arith.constant 0 : index
    %23 = vector.load %arg9[%c0_20, %c0_21] : memref<1x16xf32, #tpu.memory_space<vmem>>, vector<1x16xf32>
    %cst_22 = arith.constant dense<0.000000e+00> : vector<8x16xf32>
    %24 = tpu.matmul %21, %22, %cst_22 {dimension_numbers = #tpu.dot_dimension_numbers<[1], [0], [0], [1], [0, 0, 1, 1], [], []>} : vector<8x128xf32>, vector<128x16xf32>, vector<8x16xf32> -> vector<8x16xf32>
    %25 = vector.broadcast %23 : vector<1x16xf32> to vector<8x16xf32>
    %26 = arith.addf %24, %25 : vector<8x16xf32>
    %27 = arith.negf %26 : vector<8x16xf32>
    %28 = math.exp %27 : vector<8x16xf32>
    %cst_23 = arith.constant 1.000000e+00 : f32
    %29 = vector.broadcast %cst_23 : f32 to vector<8x16xf32>
    %30 = arith.addf %29, %28 : vector<8x16xf32>
    %31 = arith.divf %29, %30 : vector<8x16xf32>
    %c0_24 = arith.constant 0 : index
    %c0_25 = arith.constant 0 : index
    %32 = vector.load %arg10[%c0_24, %c0_25] : memref<8x16xf32, #tpu.memory_space<vmem>>, vector<8x16xf32>
    tpu.vector_store %arg10[%c0_24, %c0_25], %31 {strides = array<i32>} : memref<8x16xf32, #tpu.memory_space<vmem>>, vector<8x16xf32>,
    return
  }
  func.func @transform_0(%arg0: i32) -> (i32, i32) {
    %c0_i32 = arith.constant 0 : i32
    %c0_i32_0 = arith.constant 0 : i32
    return %arg0, %c0_i32 : i32, i32
  }
  func.func @transform_1(%arg0: i32) -> (i32, i32) {
    %c0_i32 = arith.constant 0 : i32
    %c0_i32_0 = arith.constant 0 : i32
    %c0_i32_1 = arith.constant 0 : i32
    return %c0_i32, %c0_i32_0 : i32, i32
  }
  func.func @transform_2(%arg0: i32) -> (i32, i32) {
    %c0_i32 = arith.constant 0 : i32
    %c0_i32_0 = arith.constant 0 : i32
    %c0_i32_1 = arith.constant 0 : i32
    return %c0_i32, %c0_i32_0 : i32, i32
  }
  func.func @transform_3(%arg0: i32) -> (i32, i32) {
    %c0_i32 = arith.constant 0 : i32
    %c0_i32_0 = arith.constant 0 : i32
    %c0_i32_1 = arith.constant 0 : i32
    return %c0_i32, %c0_i32_0 : i32, i32
  }
  func.func @transform_4(%arg0: i32) -> (i32, i32) {
    %c0_i32 = arith.constant 0 : i32
    %c0_i32_0 = arith.constant 0 : i32
    %c0_i32_1 = arith.constant 0 : i32
    return %c0_i32, %c0_i32_0 : i32, i32
  }
  func.func @transform_5(%arg0: i32) -> (i32, i32) {
    %c0_i32 = arith.constant 0 : i32
    %c0_i32_0 = arith.constant 0 : i32
    %c0_i32_1 = arith.constant 0 : i32
    return %c0_i32, %c0_i32_0 : i32, i32
  }
  func.func @transform_6(%arg0: i32) -> (i32, i32) {
    %c0_i32 = arith.constant 0 : i32
    %c0_i32_0 = arith.constant 0 : i32
    %c0_i32_1 = arith.constant 0 : i32
    return %c0_i32, %c0_i32_0 : i32, i32
  }
  func.func @transform_7(%arg0: i32) -> (i32, i32) {
    %c0_i32 = arith.constant 0 : i32
    %c0_i32_0 = arith.constant 0 : i32
    %c0_i32_1 = arith.constant 0 : i32
    return %c0_i32, %c0_i32_0 : i32, i32
  }
  func.func @transform_8(%arg0: i32) -> (i32, i32) {
    %c0_i32 = arith.constant 0 : i32
    %c0_i32_0 = arith.constant 0 : i32
    %c0_i32_1 = arith.constant 0 : i32
    return %c0_i32, %c0_i32_0 : i32, i32
  }
  func.func @transform_9(%arg0: i32) -> (i32, i32) {
    %c0_i32 = arith.constant 0 : i32
    %c0_i32_0 = arith.constant 0 : i32
    return %arg0, %c0_i32 : i32, i32
  }
}

</mosaic_0001>

<bundles_post_ra>
// kernel: tpu_custom_call.1
= control target key start
LH: loop header
LB: loop body
LE: loop exit
PB: predicated region body
PF: predicated region fallthrough
CT: control target
= control target key end

     0   :  { %14 = vsyncpa [#allocation3], 0  ;;  %s966_s0 = inlined_call_operand.vmem [shape: f32[8,32], index: 0, kind: input, shape index: {}]   ;;  %s967_s1 = inlined_call_operand.vmem [shape: f32[32,128], index: 1, kind: input, shape index: {}]   ;;  %s968_s2 = inlined_call_operand.vmem [shape: f32[1,128], index: 2, kind: input, shape index: {}]   ;;  %s969_s3 = inlined_call_operand.hbm [shape: f32[128,256], index: 3, kind: input, shape index: {}]   ;;  %s970_s4 = inlined_call_operand.vmem [shape: f32[1,256], index: 4, kind: input, shape index: {}]   ;;  %s971_s5 = inlined_call_operand.hbm [shape: f32[256,128], index: 5, kind: input, shape index: {}]   ;;  %s972_s6 = inlined_call_operand.vmem [shape: f32[1,128], index: 6, kind: input, shape index: {}]   ;;  %s973_s7 = inlined_call_operand.vmem [shape: f32[128,16], index: 7, kind: input, shape index: {}]   ;;  %s974_s8 = inlined_call_operand.vmem [shape: f32[1,16], index: 8, kind: input, shape index: {}]   ;;  %s975_s9 = inlined_call_operand.hbm [shape: f32[8,16], index: 9, kind: output, shape index: {}]  }
   0x1   :  { %15 = vsyncpa [#allocation6], 0 }
   0x2   :  { %16 = vsyncpa [#allocation4], 0  ;;  %s780_s30 = smov [#allocation2]   ;;  %s708_s13 = scalar_lea.hbm %s969_s3, 4096 }
   0x3   :  { %s28_s10 = sshll.u32 %s780_s30, 4  ;;  %p709_p0 = scmp.ne.s32.totalorder %s969_s3, %s708_s13  ;;  %s29_s10 = int_to_ptr.vmem [resolvable:$true] %s28_s10 }
   0x4   :  { %p712_p1 = scmp.lt.u32.totalorder %s708_s13, %s969_s3 }
   0x6   :  { %p714_p2 = pnand %p712_p1, %p709_p0 }
   0x8   :  { %717 = shalt.err (!%p714_p2)
}
   0x9   :  { %s718_s18 = scalar_lea.vmem %s29_s10, 4096  ;;  %p723_p4 = scmp.lt.s32.totalorder %s29_s10, %s29_s10 }
   0xa   :  { %p719_p3 = scmp.ne.s32.totalorder %s29_s10, %s718_s18  ;;  %p724_p5 = scmp.lt.s32.totalorder %s718_s18, %s718_s18 }
   0xc   :  { %p725_p6 = por %p724_p5, %p723_p4 }
   0xe   :  { %p726_p7 = pnand %p725_p6, %p719_p3 }
  0x10   :  { %729 = shalt.err (!%p726_p7)
}
  0x11   :  { %s781_s19 = smov 256   ;;  %s782_s20 = smov 16  }
  0x12   :  { %34 = dma.hbm_to_vmem [thread:$0]  %s969_s3, 4096, %s29_s10, [#allocation3], %s781_s19, %s781_s19, %s782_s20  }
  0x13   :  { %s783_s23 = smov [#allocation5]   ;;  %s730_s27 = scalar_lea.hbm %s971_s5, 4096 }
  0x14   :  { %s42_s24 = sshll.u32 %s783_s23, 4  ;;  %p731_p8 = scmp.ne.s32.totalorder %s971_s5, %s730_s27  ;;  %s43_s24 = int_to_ptr.vmem [resolvable:$true] %s42_s24 }
  0x15   :  { %p734_p9 = scmp.lt.u32.totalorder %s730_s27, %s971_s5 }
  0x17   :  { %p736_p10 = pnand %p734_p9, %p731_p8 }
  0x19   :  { %739 = shalt.err (!%p736_p10)
}
  0x1a   :  { %s740_s12 = scalar_lea.vmem %s43_s24, 4096  ;;  %p745_p12 = scmp.lt.s32.totalorder %s43_s24, %s43_s24 }
  0x1b   :  { %p741_p11 = scmp.ne.s32.totalorder %s43_s24, %s740_s12  ;;  %p746_p13 = scmp.lt.s32.totalorder %s740_s12, %s740_s12 }
  0x1d   :  { %p747_p0 = por %p746_p13, %p745_p12 }
  0x1f   :  { %p748_p1 = pnand %p747_p0, %p741_p11 }
  0x21   :  { %751 = shalt.err (!%p748_p1)
}
  0x22   :  { %s784_s3 = smov 128   ;;  %s785_s10 = smov 8  }
  0x23   :  { %48 = dma.hbm_to_vmem [thread:$0]  %s971_s5, 4096, %s43_s24, [#allocation6], %s784_s3, %s784_s3, %s785_s10  }
  0x24   :  { %774 = dma.done.wait [#allocation3], 4096  }
  0x25   :  { %775 = vsyncadd [#allocation3], 4294963200 }
  0x26   :  { %776 = dma.done.wait [#allocation6], 4096  }
  0x27   :  { %777 = vsyncadd [#allocation6], 4294963200  ;;  %v786_v0 = vmov 0.0|0.0   ;;  %vm787_vm0 = vmmov 0   ;;  %v788_v1 = vmov 0.0   ;;  %v62_v2 = vld [vmem:[%s967_s1] sm:$0xff] }
  0x28   :  { %600 = vmatprep.subr.bf16.mxu0 %v786_v0  ;;  %562 = vmatprep.mubr.msk.f32.mxu0 %vm787_vm0, %v788_v1  ;;  %v63_v3 = vld [vmem:[%s967_s1 + $0x8] sm:$0xff]  ;;  %v64_v4 = vld [vmem:[%s967_s1 + $0x10] sm:$0xff]  ;;  %v65_v6 = vld [vmem:[%s967_s1 + $0x18] sm:$0xff]  ;;  %vm73_vm1 = vcmask 261120   ;;  %vm474_vm2 = vcmask 130048  }
  0x29   :  { %256 = vmatprep.mubr.f32.mxu1 %v788_v1  ;;  %v601_v5 = vpack.c.bf16 %v63_v3, %v62_v2  ;;  %v149_v7 = vld [vmem:[#allocation2 + $0x8] sm:$0xff]  ;;  %v151_v8 = vld [vmem:[#allocation2 + $0x18] sm:$0xff]  ;;  %v148_v9 = vld [vmem:[#allocation2] sm:$0xff]  ;;  %v604_v11 = vpack.c.bf16 %v65_v6, %v64_v4 }
  0x2a   :  { %v150_v10 = vld [vmem:[#allocation2 + $0x10] sm:$0xff]  ;;  %v606_v12 = vpack.c.bf16 %v151_v8, %v149_v7  ;;  %v153_v14 = vld [vmem:[#allocation2 + $0x28] sm:$0xff]  ;;  %v155_v15 = vld [vmem:[#allocation2 + $0x38] sm:$0xff] }
  0x2b   :  { %602 = vmatpush3.bf16.msra.mxu0 %v601_v5  ;;  %v608_v13 = vpack.c.bf16 %v150_v10, %v148_v9  ;;  %v152_v16 = vld [vmem:[#allocation2 + $0x20] sm:$0xff]  ;;  %v610_v17 = vpack.c.bf16 %v155_v15, %v153_v14  ;;  %v154_v18 = vld [vmem:[#allocation2 + $0x30] sm:$0xff]  ;;  %v157_v19 = vld [vmem:[#allocation2 + $0x48] sm:$0xff] }
  0x2c   :  { %603 = vmatprep.subr.bf16.mxu0 %v786_v0  ;;  %v159_v20 = vld [vmem:[#allocation2 + $0x58] sm:$0xff]  ;;  %607 = vmatprep.subr.bf16.mxu1 %v606_v12  ;;  %v612_v21 = vpack.c.bf16 %v154_v18, %v152_v16  ;;  %v61_v22 = vld [vmem:[%s966_s0] sm:$0xff]  ;;  %v158_v25 = vld [vmem:[#allocation2 + $0x50] sm:$0xff] }
  0x2d   :  { %609 = vmatpush1.bf16.msra.mxu1 %v608_v13  ;;  %v614_v23 = vpack.c.bf16 %v159_v20, %v157_v19  ;;  %v156_v24 = vld [vmem:[#allocation2 + $0x40] sm:$0xff]  ;;  %v161_v26 = vld [vmem:[#allocation2 + $0x68] sm:$0xff]  ;;  %v163_v27 = vld [vmem:[#allocation2 + $0x78] sm:$0xff] }
  0x2e   :  { %611 = vmatprep.subr.bf16.mxu1 %v610_v17  ;;  %v616_v28 = vpack.c.bf16 %v158_v25, %v156_v24  ;;  %v618_v29 = vpack.c.bf16 %v163_v27, %v161_v26  ;;  %v160_v30 = vld [vmem:[#allocation2 + $0x60] sm:$0xff]  ;;  %v162_v31 = vld [vmem:[#allocation2 + $0x70] sm:$0xff]  ;;  %v165_v32 = vld [vmem:[#allocation2 + $0x88] sm:$0xff] }
  0x2f   :  { %605 = vmatpush3.bf16.msra.mxu0 %v604_v11  ;;  %v167_v33 = vld [vmem:[#allocation2 + $0x98] sm:$0xff]  ;;  %v620_v34 = vpack.c.bf16 %v162_v31, %v160_v30  ;;  %v164_v36 = vld [vmem:[#allocation2 + $0x80] sm:$0xff]  ;;  %v166_v37 = vld [vmem:[#allocation2 + $0x90] sm:$0xff] }
  0x30   :  { %v622_v35 = vpack.c.bf16 %v167_v33, %v165_v32  ;;  %v169_v38 = vld [vmem:[#allocation2 + $0xa8] sm:$0xff]  ;;  %v171_v39 = vld [vmem:[#allocation2 + $0xb8] sm:$0xff]  ;;  %v624_v40 = vpack.c.bf16 %v166_v37, %v164_v36  ;;  %v168_v42 = vld [vmem:[#allocation2 + $0xa0] sm:$0xff] }
  0x31   :  { %613 = vmatpush1.bf16.msra.mxu1 %v612_v21  ;;  %v626_v41 = vpack.c.bf16 %v171_v39, %v169_v38  ;;  %v170_v43 = vld [vmem:[#allocation2 + $0xb0] sm:$0xff]  ;;  %v173_v44 = vld [vmem:[#allocation2 + $0xc8] sm:$0xff]  ;;  %v175_v45 = vld [vmem:[#allocation2 + $0xd8] sm:$0xff] }
  0x32   :  { %563 = vmatmul.mubr.msk.f32.vlgmr.msra.gmra.mrb[0].mxu0 %vm73_vm1, %v61_v22  ;;  %615 = vmatprep.subr.bf16.mxu1 %v614_v23  ;;  %v628_v46 = vpack.c.bf16 %v170_v43, %v168_v42  ;;  %v630_v47 = vpack.c.bf16 %v175_v45, %v173_v44  ;;  %v172_v48 = vld [vmem:[#allocation2 + $0xc0] sm:$0xff]  ;;  %v174_v49 = vld [vmem:[#allocation2 + $0xd0] sm:$0xff]  ;;  %v177_v51 = vld [vmem:[#allocation2 + $0xe8] sm:$0xff] }
  0x33   :  { %v632_v50 = vpack.c.bf16 %v174_v49, %v172_v48  ;;  %v179_v52 = vld [vmem:[#allocation2 + $0xf8] sm:$0xff]  ;;  %v176_v54 = vld [vmem:[#allocation2 + $0xe0] sm:$0xff]  ;;  %v178_v55 = vld [vmem:[#allocation2 + $0xf0] sm:$0xff] }
  0x34   :  { %v634_v53 = vpack.c.bf16 %v179_v52, %v177_v51  ;;  %v636_v56 = vpack.c.bf16 %v178_v55, %v176_v54  ;;  %v281_v57 = vld [vmem:[#allocation5 + $0x80] sm:$0xff]  ;;  %v282_v58 = vld [vmem:[#allocation5 + $0x88] sm:$0xff]  ;;  %v283_v62 = vld [vmem:[#allocation5 + $0x90] sm:$0xff] }
  0x35   :  { %617 = vmatpush1.bf16.msra.mxu1 %v616_v28  ;;  %v265_v59 = vld [vmem:[#allocation5] sm:$0xff]  ;;  %v638_v60 = vpack.c.bf16 %v282_v58, %v281_v57  ;;  %v266_v61 = vld [vmem:[#allocation5 + $0x8] sm:$0xff]  ;;  %v284_v63 = vld [vmem:[#allocation5 + $0x98] sm:$0xff] }
  0x36   :  { %619 = vmatprep.subr.bf16.mxu1 %v618_v29  ;;  %v640_v2 = vpack.c.bf16 %v266_v61, %v265_v59  ;;  %v642_v3 = vpack.c.bf16 %v284_v63, %v283_v62  ;;  %v267_v4 = vld [vmem:[#allocation5 + $0x10] sm:$0xff]  ;;  %v268_v5 = vld [vmem:[#allocation5 + $0x18] sm:$0xff]  ;;  %v285_v6 = vld [vmem:[#allocation5 + $0xa0] sm:$0xff] }
  0x37   :  { %639 = vmatprep.subr.bf16.mxu0 %v638_v60  ;;  %v286_v7 = vld [vmem:[#allocation5 + $0xa8] sm:$0xff]  ;;  %v644_v8 = vpack.c.bf16 %v268_v5, %v267_v4  ;;  %v269_v10 = vld [vmem:[#allocation5 + $0x20] sm:$0xff]  ;;  %v287_v12 = vld [vmem:[#allocation5 + $0xb0] sm:$0xff] }
  0x38   :  { %641 = vmatpush3.bf16.msra.mxu0 %v640_v2  ;;  %v646_v9 = vpack.c.bf16 %v286_v7, %v285_v6  ;;  %v270_v11 = vld [vmem:[#allocation5 + $0x28] sm:$0xff]  ;;  %v288_v13 = vld [vmem:[#allocation5 + $0xb8] sm:$0xff]  ;;  %v271_v16 = vld [vmem:[#allocation5 + $0x30] sm:$0xff] }
  0x39   :  { %621 = vmatpush1.bf16.msra.mxu1 %v620_v34  ;;  %643 = vmatprep.subr.bf16.mxu0 %v642_v3  ;;  %v648_v14 = vpack.c.bf16 %v270_v11, %v269_v10  ;;  %v650_v15 = vpack.c.bf16 %v288_v13, %v287_v12  ;;  %v272_v17 = vld [vmem:[#allocation5 + $0x38] sm:$0xff]  ;;  %v289_v18 = vld [vmem:[#allocation5 + $0xc0] sm:$0xff]  ;;  %v290_v19 = vld [vmem:[#allocation5 + $0xc8] sm:$0xff]  ;;  %v182_v3 = vlaneseq }
  0x3a   :  { %623 = vmatprep.subr.bf16.mxu1 %v622_v35  ;;  %v652_v20 = vpack.c.bf16 %v272_v17, %v271_v16  ;;  %v654_v21 = vpack.c.bf16 %v290_v19, %v289_v18  ;;  %v273_v22 = vld [vmem:[#allocation5 + $0x40] sm:$0xff]  ;;  %v274_v23 = vld [vmem:[#allocation5 + $0x48] sm:$0xff]  ;;  %v291_v24 = vld [vmem:[#allocation5 + $0xd0] sm:$0xff] }
  0x3b   :  { %v292_v25 = vld [vmem:[#allocation5 + $0xd8] sm:$0xff]  ;;  %v656_v26 = vpack.c.bf16 %v274_v23, %v273_v22  ;;  %v275_v28 = vld [vmem:[#allocation5 + $0x50] sm:$0xff]  ;;  %v293_v30 = vld [vmem:[#allocation5 + $0xe0] sm:$0xff]  ;;  %v183_v4 = vshrl.u32 %v182_v3, 7 }
  0x3c   :  { %645 = vmatpush3.bf16.msra.mxu0 %v644_v8  ;;  %v658_v27 = vpack.c.bf16 %v292_v25, %v291_v24  ;;  %v276_v29 = vld [vmem:[#allocation5 + $0x58] sm:$0xff]  ;;  %v294_v31 = vld [vmem:[#allocation5 + $0xe8] sm:$0xff]  ;;  %v492_v34 = vld [vmem:[%s968_s2] ss:$0 sm:$0xff] }
  0x3d   :  { %625 = vmatpush1.bf16.msra.mxu1 %v624_v40  ;;  %647 = vmatprep.subr.bf16.mxu0 %v646_v9  ;;  %v660_v32 = vpack.c.bf16 %v276_v29, %v275_v28  ;;  %v662_v33 = vpack.c.bf16 %v294_v31, %v293_v30  ;;  %v277_v39 = vld [vmem:[#allocation5 + $0x60] sm:$0xff]  ;;  %v278_v40 = vld [vmem:[#allocation5 + $0x68] sm:$0xff]  ;;  %v295_v42 = vld [vmem:[#allocation5 + $0xf0] sm:$0xff]  ;;  %v184_v5 = vsub.s32 0, %v183_v4  ;;  %v188_v7 = vsub.s32 1, %v183_v4 }
  0x3e   :  { %627 = vmatprep.subr.bf16.mxu1 %v626_v41  ;;  %v664_v41 = vpack.c.bf16 %v278_v40, %v277_v39  ;;  %v296_v43 = vld [vmem:[#allocation5 + $0xf8] sm:$0xff]  ;;  %v279_v45 = vld [vmem:[#allocation5 + $0x70] sm:$0xff]  ;;  %v375_v48 = vld [vmem:[%s973_s7] sm:$0xff] }
  0x3f   :  { %v666_v44 = vpack.c.bf16 %v296_v43, %v295_v42  ;;  %v377_v49 = vld [vmem:[%s973_s7 + $0x10] sm:$0xff]  ;;  %v378_v51 = vld [vmem:[%s973_s7 + $0x18] sm:$0xff]  ;;  %v380_v54 = vld [vmem:[%s973_s7 + $0x28] sm:$0xff] }
  0x40   :  { %649 = vmatpush3.bf16.msra.mxu0 %v648_v14  ;;  %v674_v52 = vpack.c.bf16 %v378_v51, %v377_v49  ;;  %v382_v57 = vld [vmem:[%s973_s7 + $0x38] sm:$0xff]  ;;  %v383_v59 = vld [vmem:[%s973_s7 + $0x40] sm:$0xff]  ;;  %v384_v60 = vld [vmem:[%s973_s7 + $0x48] sm:$0xff] }
  0x41   :  { %629 = vmatpush1.bf16.msra.mxu1 %v628_v46  ;;  %651 = vmatprep.subr.bf16.mxu0 %v650_v15  ;;  %v280_v46 = vld [vmem:[#allocation5 + $0x78] sm:$0xff]  ;;  %v683_v61 = vpack.c.bf16 %v384_v60, %v383_v59  ;;  %v385_v62 = vld [vmem:[%s973_s7 + $0x50] sm:$0xff]  ;;  %v180_v6 = vld [vmem:[%s970_s4] sm:$0x3] }
  0x42   :  { %631 = vmatprep.subr.bf16.mxu1 %v630_v47  ;;  %v668_v47 = vpack.c.bf16 %v280_v46, %v279_v45  ;;  %v386_v63 = vld [vmem:[%s973_s7 + $0x58] sm:$0xff]  ;;  %v185_v8 = vrot.slane %v180_v6, %v184_v5  ;;  %v189_v9 = vrot.slane %v180_v6, %v188_v7  ;;  %v387_v16 = vld [vmem:[%s973_s7 + $0x60] sm:$0xff]  ;;  %v388_v17 = vld [vmem:[%s973_s7 + $0x68] sm:$0xff] }
  0x43   :  { %v686_v2 = vpack.c.bf16 %v386_v63, %v385_v62  ;;  %v689_v18 = vpack.c.bf16 %v388_v17, %v387_v16  ;;  %v389_v19 = vld [vmem:[%s973_s7 + $0x70] sm:$0xff]  ;;  %v494_v23 = vld [vmem:[%s972_s6] ss:$0 sm:$0xff] }
  0x44   :  { %653 = vmatpush3.bf16.msra.mxu0 %v652_v20  ;;  %v390_v20 = vld [vmem:[%s973_s7 + $0x78] sm:$0xff] }
  0x45   :  { %633 = vmatpush1.bf16.msra.mxu1 %v632_v50  ;;  %655 = vmatprep.subr.bf16.mxu0 %v654_v21  ;;  %v692_v21 = vpack.c.bf16 %v390_v20, %v389_v19 }
  0x46   :  { %635 = vmatprep.subr.bf16.mxu1 %v634_v53  ;;  %v379_v53 = vld [vmem:[%s973_s7 + $0x20] sm:$0xff] }
  0x47   :  { %v677_v55 = vpack.c.bf16 %v380_v54, %v379_v53 }
  0x48   :  { %657 = vmatpush3.bf16.msra.mxu0 %v656_v26 }
  0x49   :  { %637 = vmatpush1.bf16.msra.mxu1 %v636_v56  ;;  %659 = vmatprep.subr.bf16.mxu0 %v658_v27  ;;  %v381_v56 = vld [vmem:[%s973_s7 + $0x30] sm:$0xff] }
  0x4a   :  { %670 = vmatprep.subr.bf16.mxu1 %v786_v0  ;;  %v680_v58 = vpack.c.bf16 %v382_v57, %v381_v56 }
  0x4c   :  { %661 = vmatpush3.bf16.msra.mxu0 %v660_v32 }
  0x4d   :  { %663 = vmatprep.subr.bf16.mxu0 %v662_v33 }
  0x50   :  { %665 = vmatpush3.bf16.msra.mxu0 %v664_v41 }
  0x51   :  { %667 = vmatprep.subr.bf16.mxu0 %v666_v44 }
  0x54   :  { %669 = vmatpush3.bf16.msra.mxu0 %v668_v47 }
 0x105   :  { %v143_v35 = vpop.f32.mrb[0].mxu0 }
 0x106   :  { %v144_v36 = vadd.f32 %v492_v34, %v143_v35  ;;  %v564_v37 = vpop.f32.mrb[1].mxu0 }
 0x108   :  { %v147_v38 = vmax.f32 %v144_v36, 0.0 }
 0x10a   :  { %257 = vmatmul.mubr.f32.vlgmr.msra.gmra.mrb[0].mxu1 %v147_v38 }
 0x10b   :  { %597 = vmatprep.mubr.msk.f32.mxu1 %vm787_vm0, %v788_v1  ;;  %v376_v1 = vld [vmem:[%s973_s7 + $0x8] sm:$0xff]  ;;  %s789_s7 = smov [#allocation7]  }
 0x10c   :  { %v671_v50 = vpack.c.bf16 %v376_v1, %v375_v48  ;;  %s482_s10 = sshll.u32 %s789_s7, 4  ;;  %s483_s10 = int_to_ptr.vmem [resolvable:$true] %s482_s10 }
 0x10d   :  { %s752_s6 = scalar_lea.vmem %s483_s10, 128  ;;  %p757_p3 = scmp.lt.s32.totalorder %s483_s10, %s483_s10 }
 0x10e   :  { %672 = vmatpush3.bf16.msra.mxu1 %v671_v50  ;;  %p753_p2 = scmp.ne.s32.totalorder %s483_s10, %s752_s6  ;;  %p758_p4 = scmp.lt.s32.totalorder %s752_s6, %s752_s6 }
 0x10f   :  { %673 = vmatprep.subr.bf16.mxu1 %v786_v0 }
 0x110   :  { %p759_p5 = por %p758_p4, %p757_p3 }
 0x112   :  { %675 = vmatpush3.bf16.msra.mxu1 %v674_v52  ;;  %p760_p6 = pnand %p759_p5, %p753_p2 }
 0x113   :  { %676 = vmatprep.subr.bf16.mxu1 %v786_v0 }
 0x116   :  { %678 = vmatpush3.bf16.msra.mxu1 %v677_v55 }
 0x117   :  { %679 = vmatprep.subr.bf16.mxu1 %v786_v0 }
 0x11a   :  { %681 = vmatpush3.bf16.msra.mxu1 %v680_v58 }
 0x11b   :  { %682 = vmatprep.subr.bf16.mxu1 %v786_v0 }
 0x11e   :  { %684 = vmatpush3.bf16.msra.mxu1 %v683_v61 }
 0x11f   :  { %685 = vmatprep.subr.bf16.mxu1 %v786_v0 }
 0x122   :  { %687 = vmatpush3.bf16.msra.mxu1 %v686_v2 }
 0x123   :  { %688 = vmatprep.subr.bf16.mxu1 %v786_v0 }
 0x126   :  { %690 = vmatpush3.bf16.msra.mxu1 %v689_v18 }
 0x127   :  { %691 = vmatprep.subr.bf16.mxu1 %v786_v0  ;;  %v495_v0 = vld [vmem:[%s974_s8] ss:$0 sm:$0xff] }
 0x12a   :  { %693 = vmatpush3.bf16.msra.mxu1 %v692_v21 }
 0x1dd   :  { %v258_v10 = vpop.f32.mrb[0].mxu1 }
 0x1de   :  { %v259_v11 = vadd.f32 %v258_v10, %v185_v8  ;;  %v260_v12 = vpop.f32.mrb[1].mxu1 }
 0x1df   :  { %v261_v13 = vadd.f32 %v260_v12, %v189_v9 }
 0x1e0   :  { %v263_v15 = vmax.f32 %v259_v11, 0.0 }
 0x1e1   :  { %v264_v14 = vmax.f32 %v261_v13, 0.0 }
 0x1e3   :  { %368 = vmatprep.mubr.f32.mxu0 %v264_v14 }
 0x1e4   :  { %369 = vmatmul.mubr.f32.vlgmr.msra.gmra.mrb[2].mxu0 %v263_v15 }
 0x2b7   :  { %v534_v22 = vpop.f32.mrb[2].mxu0 }
 0x2b8   :  { %v535_v24 = vpop.f32.mrb[3].mxu0 }
 0x2b9   :  { %v536_v25 = vadd.f32 %v535_v24, %v534_v22 }
 0x2bb   :  { %v371_v26 = vadd.f32 %v536_v25, %v494_v23 }
 0x2bd   :  { %v374_v27 = vmax.f32 %v371_v26, 0.0 }
 0x2bf   :  { %598 = vmatmul.mubr.f32.vlgmr.msra.gmra.mrb[2].mxu1 %v374_v27 }
 0x392   :  { %v464_v28 = vpop.f32.mrb[2].mxu1 }
 0x393   :  { %v465_v29 = vadd.f32 %v495_v0, %v464_v28  ;;  %v599_v30 = vpop.f32.mrb[3].mxu1 }
 0x395   :  { %v496_v31 = vmul.f32 -1.442695, %v465_v29 }
 0x397   :  { %704 = vpow2.f32 %v496_v31 }
 0x3a1   :  { %v705_v32 = vpop.eup %704 }
 0x3a2   :  { %v471_v33 = vadd.f32 1.0, %v705_v32 }
 0x3a4   :  { %706 = vrcp.f32 %v471_v33 }
 0x3ae   :  { %v707_v34 = vpop.eup %706 }
 0x3af   :  { %475 = vst.msk [vmem:[#allocation7] sm:$0xff] %vm474_vm2, %v707_v34 }
 0x3b0   :  { %763 = shalt.err (!%p760_p6)
}
 0x3b1   :  { %s764_s14 = scalar_lea.hbm %s975_s9, 128 }
 0x3b2   :  { %p765_p7 = scmp.ne.s32.totalorder %s975_s9, %s764_s14  ;;  %p768_p8 = scmp.lt.u32.totalorder %s764_s14, %s975_s9 }
 0x3b4   :  { %p770_p9 = pnand %p768_p8, %p765_p7 }
 0x3b6   :  { %773 = shalt.err (!%p770_p9)
}
 0x3b7   :  { %485 = dma.vmem_to_hbm [thread:$0]  %s483_s10, 128, %s975_s9, [#allocation4]  }
 0x3b8   :  { %778 = dma.done.wait [#allocation4], 128  }
 0x3b9   :  { %779 = vsyncadd [#allocation4], 4294967168 }
 0x3ba   :  { %489 = vsyncpa [#allocation3], 1 }
 0x3bb   :  { %490 = vsyncpa [#allocation6], 1 }
 0x3bc   :  { %491 = vsyncpa [#allocation4], 1 }

</bundles_post_ra>
